<compile_context>
chip_gen: v7x
topology: tpu7x:2x2x1
jax: 0.10.0
libtpu: 0.0.40
codegen_flags: <defaults>
</compile_context>

<pallas_src>
import jax
import jax.numpy as jnp
from jax.experimental import pallas as pl
from jax.experimental.pallas import tpu as pltpu

# ---------------- configuration (mirrors A3CNN.__init__ args) -----------------
STATE_SIZE = 16
HIDDEN_SIZE = 32
HIDDEN_NUM = 2          # -> Linear(D,H) + ReLU, Linear(H,H) + ReLU
LSTM_NUM = 32
ACTION_SIZE = 4
CONTACTION = 0          # 0 -> softmax policy
NORMALIZE = True
STATE_MIN = -1.0
STATE_MAX = 1.0

BATCH = 2
SEQ = 8

# ---------------- packed parameter slab layout (one lane-padded VMEM slab) ----
# Every section starts on a multiple of 8 rows so all in-kernel slices are
# sublane-group aligned (no cross-tile loads).  Lane padding (to 128) is zeros.
R_W1 = 0                          # (D, H)   min-max normalization folded in
R_B1 = R_W1 + STATE_SIZE          # 16,  (1, H)
R_W2 = R_B1 + 8                   # 24,  (H, H)
R_B2 = R_W2 + HIDDEN_SIZE         # 56,  (1, H)
R_WIH = R_B2 + 8                  # 64,  (H, 4L)
R_BG = R_WIH + HIDDEN_SIZE        # 96,  (1, 4L)  (= bih + bhh)
R_WHH = R_BG + 8                  # 104, (L, 4L)
R_WH = R_WHH + LSTM_NUM           # 136, (L, A+1) fused policy|value head
R_BH = R_WH + LSTM_NUM            # 168, (1, A+1)
SLAB_ROWS = R_BH + 8              # 176
SLAB_LANES = 4 * LSTM_NUM         # 128

# ---------------- lane-dense fused output slab layout: (B, 128) ---------------
OUT_POLICY = 0                    # cols [0, A)
OUT_VALUE = ACTION_SIZE           # col  A
OUT_H = 32                        # cols [32, 64)
OUT_C = 64                        # cols [64, 96)


# ------------------------------- Pallas kernel --------------------------------
def a3c_kernel(x_ref,             # (S*B, D)        time-major flattened input
               p_ref,             # (176, 128)      packed parameter slab
               out_ref):          # (B, 128)        fused policy|value|h|c slab
    SB, D = x_ref.shape
    B = out_ref.shape[0]
    S = SB // B
    H, L, A = HIDDEN_SIZE, LSTM_NUM, ACTION_SIZE

    # ---- hoisted, time-independent work (off the serial critical path):
    # MLP stack + input-hidden LSTM projection for ALL timesteps at once.
    w1 = p_ref[R_W1:R_W1 + D, 0:H]
    b1 = p_ref[R_B1:R_B1 + 1, 0:H]
    w2 = p_ref[R_W2:R_W2 + H, 0:H]
    b2 = p_ref[R_B2:R_B2 + 1, 0:H]
    wih = p_ref[R_WIH:R_WIH + H, :]
    bg = p_ref[R_BG:R_BG + 1, :]
    whh = p_ref[R_WHH:R_WHH + L, :]          # hoisted loop-invariant load

    a = jnp.maximum(
        jnp.dot(x_ref[...], w1, preferred_element_type=jnp.float32) + b1, 0.0)
    a = jnp.maximum(
        jnp.dot(a, w2, preferred_element_type=jnp.float32) + b2, 0.0)
    # gx stays an SSA value (2 vregs) -> no VMEM scratch round trip.
    gx = jnp.dot(a, wih, preferred_element_type=jnp.float32) + bg    # (S*B, 4L)

    # ---- serial LSTM recurrence (PyTorch gate order i, f, g, o).
    # Statically unrolled: every slice below is a compile-time-constant slice
    # and h/c stay in vregs for the whole recurrence.
    h = jnp.zeros((B, L), jnp.float32)
    c = jnp.zeros((B, L), jnp.float32)
    for t in range(S):
        gates = gx[t * B:(t + 1) * B, :] + jnp.dot(
            h, whh, preferred_element_type=jnp.float32)              # (B, 4L)
        sg = jax.nn.sigmoid(gates)   # one full-width EUP pass (i, f, o gates)
        tg = jnp.tanh(gates)         # one full-width EUP pass (g gate)
        i_g = sg[:, 0 * L:1 * L]
        f_g = sg[:, 1 * L:2 * L]
        g_g = tg[:, 2 * L:3 * L]
        o_g = sg[:, 3 * L:4 * L]
        c = f_g * c + i_g * g_g
        h = o_g * jnp.tanh(c)

    # ---- fused policy + value heads: one tiny MXU push, exact softmax.
    wh = p_ref[R_WH:R_WH + L, 0:A + 1]
    bh = p_ref[R_BH:R_BH + 1, 0:A + 1]
    heads = jnp.dot(h, wh, preferred_element_type=jnp.float32) + bh  # (B, A+1)
    logits = heads[:, 0:A]
    if CONTACTION == 0:
        m = jnp.max(logits, axis=-1, keepdims=True)
        e = jnp.exp(logits - m)
        policy = e / jnp.sum(e, axis=-1, keepdims=True)              # exact
    else:
        policy = logits
    value = heads[:, A:A + 1]

    # ---- single lane-dense output buffer -> one writeback DMA.
    out_ref[...] = jnp.zeros((B, SLAB_LANES), jnp.float32)
    out_ref[:, OUT_POLICY:OUT_POLICY + A] = policy
    out_ref[:, OUT_VALUE:OUT_VALUE + 1] = value
    out_ref[:, OUT_H:OUT_H + L] = h
    out_ref[:, OUT_C:OUT_C + L] = c


# -------------------- one-time parameter folding + packing --------------------
def prepare_params(p):
    """Fold normalization / biases / heads and pack everything into one slab.

    Called ONCE; a3cnn_forward then takes only (x, param_slab)."""
    inv = 1.0 / (STATE_MAX - STATE_MIN)
    if NORMALIZE:
        w1f = p["w1"] * inv
        b1f = p["b1"] - STATE_MIN * inv * jnp.sum(p["w1"], axis=0, keepdims=True)
    else:
        w1f, b1f = p["w1"], p["b1"]
    bg = p["bih"] + p["bhh"]                                   # (1, 4L)
    wh = jnp.concatenate([p["wp"], p["wv"]], axis=1)           # (L, A+1)
    bh = jnp.concatenate([p["bp"], p["bv"]], axis=1)           # (1, A+1)

    slab = jnp.zeros((SLAB_ROWS, SLAB_LANES), jnp.float32)
    for row, arr in ((R_W1, w1f), (R_B1, b1f), (R_W2, p["w2"]), (R_B2, p["b2"]),
                     (R_WIH, p["wih"]), (R_BG, bg), (R_WHH, p["whh"]),
                     (R_WH, wh), (R_BH, bh)):
        r, cdim = arr.shape
        slab = slab.at[row:row + r, 0:cdim].set(arr.astype(jnp.float32))
    return slab


# ------------------------------- per-call wrapper ------------------------------
@jax.jit
def a3cnn_forward(x_bsd, param_slab):
    """x_bsd: (B, S, state_size) float32. Returns (policy, value, (h, c))."""
    B, S, D = x_bsd.shape
    # Time-major 2-D slab; the only per-call prep left in the wrapper.
    x_flat = jnp.transpose(x_bsd, (1, 0, 2)).reshape(S * B, D)

    out = pl.pallas_call(
        a3c_kernel,
        grid=(1,),
        in_specs=[pl.BlockSpec((S * B, D), lambda i: (0, 0)),
                  pl.BlockSpec((SLAB_ROWS, SLAB_LANES), lambda i: (0, 0))],
        out_specs=pl.BlockSpec((B, SLAB_LANES), lambda i: (0, 0)),
        out_shape=jax.ShapeDtypeStruct((B, SLAB_LANES), jnp.float32),
        compiler_params=pltpu.CompilerParams(
            dimension_semantics=("arbitrary",)),
    )(x_flat, param_slab)

    policy = out[:, OUT_POLICY:OUT_POLICY + ACTION_SIZE]
    value = out[:, OUT_VALUE:OUT_VALUE + 1]
    h = out[:, OUT_H:OUT_H + LSTM_NUM]
    c = out[:, OUT_C:OUT_C + LSTM_NUM]
    # match PyTorch nn.LSTM hidden_state layout (num_layers=1, B, lstm_num)
    return policy, value, (h[None], c[None])


# -------------------------- deterministic parameter init -----------------------
def init_params(key):
    ks = jax.random.split(key, 13)

    def uni(k, shape, bound):
        return jax.random.uniform(k, shape, jnp.float32, -bound, bound)

    kD = 1.0 / jnp.sqrt(STATE_SIZE)
    kH = 1.0 / jnp.sqrt(HIDDEN_SIZE)
    kL = 1.0 / jnp.sqrt(LSTM_NUM)
    return {
        # MLP stack (weights stored as (in, out))
        "w1": uni(ks[0], (STATE_SIZE, HIDDEN_SIZE), kD),
        "b1": uni(ks[1], (1, HIDDEN_SIZE), kD),
        "w2": uni(ks[2], (HIDDEN_SIZE, HIDDEN_SIZE), kH),
        "b2": uni(ks[3], (1, HIDDEN_SIZE), kH),
        # LSTM (PyTorch gate order i,f,g,o; stored transposed)
        "wih": uni(ks[4], (HIDDEN_SIZE, 4 * LSTM_NUM), kL),
        "whh": uni(ks[5], (LSTM_NUM, 4 * LSTM_NUM), kL),
        "bih": uni(ks[6], (1, 4 * LSTM_NUM), kL),
        "bhh": uni(ks[7], (1, 4 * LSTM_NUM), kL),
        # heads
        "wp": uni(ks[8], (LSTM_NUM, ACTION_SIZE), kL),
        "bp": uni(ks[9], (1, ACTION_SIZE), kL),
        "wv": uni(ks[10], (LSTM_NUM, 1), kL),
        "bv": uni(ks[11], (1, 1), kL),
    }


# ------------------------------ pure-JAX reference ------------------------------
def reference_forward(x_bsd, p):
    hp = jax.lax.Precision.HIGHEST
    x = (x_bsd - STATE_MIN) / (STATE_MAX - STATE_MIN)
    a = jax.nn.relu(jnp.dot(x, p["w1"], precision=hp) + p["b1"])
    a = jax.nn.relu(jnp.dot(a, p["w2"], precision=hp) + p["b2"])   # (B, S, H)
    B, S, _ = x_bsd.shape
    L = LSTM_NUM
    h = jnp.zeros((B, L), jnp.float32)
    c = jnp.zeros((B, L), jnp.float32)
    for t in range(S):
        gates = (jnp.dot(a[:, t, :], p["wih"], precision=hp) + p["bih"]
                 + jnp.dot(h, p["whh"], precision=hp) + p["bhh"])
        i_g = jax.nn.sigmoid(gates[:, 0 * L:1 * L])
        f_g = jax.nn.sigmoid(gates[:, 1 * L:2 * L])
        g_g = jnp.tanh(gates[:, 2 * L:3 * L])
        o_g = jax.nn.sigmoid(gates[:, 3 * L:4 * L])
        c = f_g * c + i_g * g_g
        h = o_g * jnp.tanh(c)
    logits = jnp.dot(h, p["wp"], precision=hp) + p["bp"]
    policy = jax.nn.softmax(logits, axis=-1)
    value = jnp.dot(h, p["wv"], precision=hp) + p["bv"]
    return policy, value, (h[None], c[None])


# ----------------------------------- main ---------------------------------------
if __name__ == "__main__":
    key = jax.random.PRNGKey(0)
    k_x, k_p = jax.random.split(key)
    x = jax.random.uniform(k_x, (BATCH, SEQ, STATE_SIZE), jnp.float32,
                           STATE_MIN, STATE_MAX)
    params = init_params(k_p)

    # One-time fold + pack (outside the per-call path).
    param_slab = prepare_params(params)
    param_slab.block_until_ready()

    policy, value, (h, c) = a3cnn_forward(x, param_slab)
    jax.block_until_ready((policy, value, h, c))

    # verify against pure-JAX reference (original, un-folded parameters)
    rp, rv, (rh, rc) = reference_forward(x, params)
    assert jnp.allclose(policy, rp, atol=2e-5), "policy mismatch"
    assert jnp.allclose(value, rv, atol=2e-5), "value mismatch"
    assert jnp.allclose(h, rh, atol=2e-5), "hidden h mismatch"
    assert jnp.allclose(c, rc, atol=2e-5), "hidden c mismatch"
    assert policy.shape == (BATCH, ACTION_SIZE)
    assert value.shape == (BATCH, 1)
    assert h.shape == (1, BATCH, LSTM_NUM) and c.shape == (1, BATCH, LSTM_NUM)

    print("KERNEL_OK")
</pallas_src>

<mosaic_0001>
module attributes {stable_mosaic.version = 11 : i64} {
  func.func @a3c_kernel(%arg0: i32, %arg1: memref<16x16xf32, #tpu.memory_space<vmem>>, %arg2: memref<176x128xf32, #tpu.memory_space<vmem>>, %arg3: memref<2x128xf32, #tpu.memory_space<vmem>>) attributes {dimension_semantics = [#tpu.dimension_semantics<arbitrary>], iteration_bounds = array<i64: 1>, scalar_prefetch = 0 : i64, scratch_operands = 0 : i64, tpu.core_type = #tpu.core_type<tc>, window_params = [{pipeline_mode = #tpu.pipeline_mode<synchronous>, transform_indices = @transform_0, window_bounds = array<i64: 16, 16>}, {pipeline_mode = #tpu.pipeline_mode<synchronous>, transform_indices = @transform_1, window_bounds = array<i64: 176, 128>}, {pipeline_mode = #tpu.pipeline_mode<synchronous>, transform_indices = @transform_2, window_bounds = array<i64: 2, 128>}]} {
    %c0 = arith.constant 0 : index
    %c0_0 = arith.constant 0 : index
    %0 = vector.load %arg2[%c0, %c0_0] : memref<176x128xf32, #tpu.memory_space<vmem>>, vector<16x32xf32>
    %c16 = arith.constant 16 : index
    %c0_1 = arith.constant 0 : index
    %1 = vector.load %arg2[%c16, %c0_1] : memref<176x128xf32, #tpu.memory_space<vmem>>, vector<1x32xf32>
    %c24 = arith.constant 24 : index
    %c0_2 = arith.constant 0 : index
    %2 = vector.load %arg2[%c24, %c0_2] : memref<176x128xf32, #tpu.memory_space<vmem>>, vector<32x32xf32>
    %c56 = arith.constant 56 : index
    %c0_3 = arith.constant 0 : index
    %3 = vector.load %arg2[%c56, %c0_3] : memref<176x128xf32, #tpu.memory_space<vmem>>, vector<1x32xf32>
    %c64 = arith.constant 64 : index
    %c0_4 = arith.constant 0 : index
    %4 = vector.load %arg2[%c64, %c0_4] : memref<176x128xf32, #tpu.memory_space<vmem>>, vector<32x128xf32>
    %c96 = arith.constant 96 : index
    %c0_5 = arith.constant 0 : index
    %5 = vector.load %arg2[%c96, %c0_5] : memref<176x128xf32, #tpu.memory_space<vmem>>, vector<1x128xf32>
    %c104 = arith.constant 104 : index
    %c0_6 = arith.constant 0 : index
    %6 = vector.load %arg2[%c104, %c0_6] : memref<176x128xf32, #tpu.memory_space<vmem>>, vector<32x128xf32>
    %c0_7 = arith.constant 0 : index
    %c0_8 = arith.constant 0 : index
    %7 = vector.load %arg1[%c0_7, %c0_8] : memref<16x16xf32, #tpu.memory_space<vmem>>, vector<16x16xf32>
    %cst = arith.constant dense<0.000000e+00> : vector<16x32xf32>
    %8 = tpu.matmul %7, %0, %cst {dimension_numbers = #tpu.dot_dimension_numbers<[1], [0], [0], [1], [0, 0, 1, 1], [], []>} : vector<16x16xf32>, vector<16x32xf32>, vector<16x32xf32> -> vector<16x32xf32>
    %9 = vector.broadcast %1 : vector<1x32xf32> to vector<16x32xf32>
    %10 = arith.addf %8, %9 : vector<16x32xf32>
    %cst_9 = arith.constant 0.000000e+00 : f32
    %11 = vector.broadcast %cst_9 : f32 to vector<16x32xf32>
    %12 = arith.maximumf %10, %11 : vector<16x32xf32>
    %cst_10 = arith.constant dense<0.000000e+00> : vector<16x32xf32>
    %13 = tpu.matmul %12, %2, %cst_10 {dimension_numbers = #tpu.dot_dimension_numbers<[1], [0], [0], [1], [0, 0, 1, 1], [], []>} : vector<16x32xf32>, vector<32x32xf32>, vector<16x32xf32> -> vector<16x32xf32>
    %14 = vector.broadcast %3 : vector<1x32xf32> to vector<16x32xf32>
    %15 = arith.addf %13, %14 : vector<16x32xf32>
    %cst_11 = arith.constant 0.000000e+00 : f32
    %16 = vector.broadcast %cst_11 : f32 to vector<16x32xf32>
    %17 = arith.maximumf %15, %16 : vector<16x32xf32>
    %cst_12 = arith.constant dense<0.000000e+00> : vector<16x128xf32>
    %18 = tpu.matmul %17, %4, %cst_12 {dimension_numbers = #tpu.dot_dimension_numbers<[1], [0], [0], [1], [0, 0, 1, 1], [], []>} : vector<16x32xf32>, vector<32x128xf32>, vector<16x128xf32> -> vector<16x128xf32>
    %19 = vector.broadcast %5 : vector<1x128xf32> to vector<16x128xf32>
    %20 = arith.addf %18, %19 : vector<16x128xf32>
    %cst_13 = arith.constant 0.000000e+00 : f32
    %21 = vector.broadcast %cst_13 : f32 to vector<2x32xf32>
    %cst_14 = arith.constant 0.000000e+00 : f32
    %22 = vector.broadcast %cst_14 : f32 to vector<2x32xf32>
    %23 = vector.extract_strided_slice %20 {offsets = [0, 0], sizes = [2, 128], strides = [1, 1]} : vector<16x128xf32> to vector<2x128xf32>
    %cst_15 = arith.constant dense<0.000000e+00> : vector<2x128xf32>
    %24 = tpu.matmul %21, %6, %cst_15 {dimension_numbers = #tpu.dot_dimension_numbers<[1], [0], [0], [1], [0, 0, 1, 1], [], []>} : vector<2x32xf32>, vector<32x128xf32>, vector<2x128xf32> -> vector<2x128xf32>
    %25 = arith.addf %23, %24 : vector<2x128xf32>
    %26 = arith.negf %25 : vector<2x128xf32>
    %27 = math.exp %26 : vector<2x128xf32>
    %cst_16 = arith.constant 1.000000e+00 : f32
    %28 = vector.broadcast %cst_16 : f32 to vector<2x128xf32>
    %29 = arith.addf %28, %27 : vector<2x128xf32>
    %30 = arith.divf %28, %29 : vector<2x128xf32>
    %31 = math.tanh %25 : vector<2x128xf32>
    %32 = vector.extract_strided_slice %30 {offsets = [0, 0], sizes = [2, 32], strides = [1, 1]} : vector<2x128xf32> to vector<2x32xf32>
    %33 = vector.extract_strided_slice %30 {offsets = [0, 32], sizes = [2, 32], strides = [1, 1]} : vector<2x128xf32> to vector<2x32xf32>
    %34 = vector.extract_strided_slice %31 {offsets = [0, 64], sizes = [2, 32], strides = [1, 1]} : vector<2x128xf32> to vector<2x32xf32>
    %35 = vector.extract_strided_slice %30 {offsets = [0, 96], sizes = [2, 32], strides = [1, 1]} : vector<2x128xf32> to vector<2x32xf32>
    %36 = arith.mulf %33, %22 : vector<2x32xf32>
    %37 = arith.mulf %32, %34 : vector<2x32xf32>
    %38 = arith.addf %36, %37 : vector<2x32xf32>
    %39 = math.tanh %38 : vector<2x32xf32>
    %40 = arith.mulf %35, %39 : vector<2x32xf32>
    %41 = vector.extract_strided_slice %20 {offsets = [2, 0], sizes = [2, 128], strides = [1, 1]} : vector<16x128xf32> to vector<2x128xf32>
    %cst_17 = arith.constant dense<0.000000e+00> : vector<2x128xf32>
    %42 = tpu.matmul %40, %6, %cst_17 {dimension_numbers = #tpu.dot_dimension_numbers<[1], [0], [0], [1], [0, 0, 1, 1], [], []>} : vector<2x32xf32>, vector<32x128xf32>, vector<2x128xf32> -> vector<2x128xf32>
    %43 = arith.addf %41, %42 : vector<2x128xf32>
    %44 = arith.negf %43 : vector<2x128xf32>
    %45 = math.exp %44 : vector<2x128xf32>
    %cst_18 = arith.constant 1.000000e+00 : f32
    %46 = vector.broadcast %cst_18 : f32 to vector<2x128xf32>
    %47 = arith.addf %46, %45 : vector<2x128xf32>
    %48 = arith.divf %46, %47 : vector<2x128xf32>
    %49 = math.tanh %43 : vector<2x128xf32>
    %50 = vector.extract_strided_slice %48 {offsets = [0, 0], sizes = [2, 32], strides = [1, 1]} : vector<2x128xf32> to vector<2x32xf32>
    %51 = vector.extract_strided_slice %48 {offsets = [0, 32], sizes = [2, 32], strides = [1, 1]} : vector<2x128xf32> to vector<2x32xf32>
    %52 = vector.extract_strided_slice %49 {offsets = [0, 64], sizes = [2, 32], strides = [1, 1]} : vector<2x128xf32> to vector<2x32xf32>
    %53 = vector.extract_strided_slice %48 {offsets = [0, 96], sizes = [2, 32], strides = [1, 1]} : vector<2x128xf32> to vector<2x32xf32>
    %54 = arith.mulf %51, %38 : vector<2x32xf32>
    %55 = arith.mulf %50, %52 : vector<2x32xf32>
    %56 = arith.addf %54, %55 : vector<2x32xf32>
    %57 = math.tanh %56 : vector<2x32xf32>
    %58 = arith.mulf %53, %57 : vector<2x32xf32>
    %59 = vector.extract_strided_slice %20 {offsets = [4, 0], sizes = [2, 128], strides = [1, 1]} : vector<16x128xf32> to vector<2x128xf32>
    %cst_19 = arith.constant dense<0.000000e+00> : vector<2x128xf32>
    %60 = tpu.matmul %58, %6, %cst_19 {dimension_numbers = #tpu.dot_dimension_numbers<[1], [0], [0], [1], [0, 0, 1, 1], [], []>} : vector<2x32xf32>, vector<32x128xf32>, vector<2x128xf32> -> vector<2x128xf32>
    %61 = arith.addf %59, %60 : vector<2x128xf32>
    %62 = arith.negf %61 : vector<2x128xf32>
    %63 = math.exp %62 : vector<2x128xf32>
    %cst_20 = arith.constant 1.000000e+00 : f32
    %64 = vector.broadcast %cst_20 : f32 to vector<2x128xf32>
    %65 = arith.addf %64, %63 : vector<2x128xf32>
    %66 = arith.divf %64, %65 : vector<2x128xf32>
    %67 = math.tanh %61 : vector<2x128xf32>
    %68 = vector.extract_strided_slice %66 {offsets = [0, 0], sizes = [2, 32], strides = [1, 1]} : vector<2x128xf32> to vector<2x32xf32>
    %69 = vector.extract_strided_slice %66 {offsets = [0, 32], sizes = [2, 32], strides = [1, 1]} : vector<2x128xf32> to vector<2x32xf32>
    %70 = vector.extract_strided_slice %67 {offsets = [0, 64], sizes = [2, 32], strides = [1, 1]} : vector<2x128xf32> to vector<2x32xf32>
    %71 = vector.extract_strided_slice %66 {offsets = [0, 96], sizes = [2, 32], strides = [1, 1]} : vector<2x128xf32> to vector<2x32xf32>
    %72 = arith.mulf %69, %56 : vector<2x32xf32>
    %73 = arith.mulf %68, %70 : vector<2x32xf32>
    %74 = arith.addf %72, %73 : vector<2x32xf32>
    %75 = math.tanh %74 : vector<2x32xf32>
    %76 = arith.mulf %71, %75 : vector<2x32xf32>
    %77 = vector.extract_strided_slice %20 {offsets = [6, 0], sizes = [2, 128], strides = [1, 1]} : vector<16x128xf32> to vector<2x128xf32>
    %cst_21 = arith.constant dense<0.000000e+00> : vector<2x128xf32>
    %78 = tpu.matmul %76, %6, %cst_21 {dimension_numbers = #tpu.dot_dimension_numbers<[1], [0], [0], [1], [0, 0, 1, 1], [], []>} : vector<2x32xf32>, vector<32x128xf32>, vector<2x128xf32> -> vector<2x128xf32>
    %79 = arith.addf %77, %78 : vector<2x128xf32>
    %80 = arith.negf %79 : vector<2x128xf32>
    %81 = math.exp %80 : vector<2x128xf32>
    %cst_22 = arith.constant 1.000000e+00 : f32
    %82 = vector.broadcast %cst_22 : f32 to vector<2x128xf32>
    %83 = arith.addf %82, %81 : vector<2x128xf32>
    %84 = arith.divf %82, %83 : vector<2x128xf32>
    %85 = math.tanh %79 : vector<2x128xf32>
    %86 = vector.extract_strided_slice %84 {offsets = [0, 0], sizes = [2, 32], strides = [1, 1]} : vector<2x128xf32> to vector<2x32xf32>
    %87 = vector.extract_strided_slice %84 {offsets = [0, 32], sizes = [2, 32], strides = [1, 1]} : vector<2x128xf32> to vector<2x32xf32>
    %88 = vector.extract_strided_slice %85 {offsets = [0, 64], sizes = [2, 32], strides = [1, 1]} : vector<2x128xf32> to vector<2x32xf32>
    %89 = vector.extract_strided_slice %84 {offsets = [0, 96], sizes = [2, 32], strides = [1, 1]} : vector<2x128xf32> to vector<2x32xf32>
    %90 = arith.mulf %87, %74 : vector<2x32xf32>
    %91 = arith.mulf %86, %88 : vector<2x32xf32>
    %92 = arith.addf %90, %91 : vector<2x32xf32>
    %93 = math.tanh %92 : vector<2x32xf32>
    %94 = arith.mulf %89, %93 : vector<2x32xf32>
    %95 = vector.extract_strided_slice %20 {offsets = [8, 0], sizes = [2, 128], strides = [1, 1]} : vector<16x128xf32> to vector<2x128xf32>
    %cst_23 = arith.constant dense<0.000000e+00> : vector<2x128xf32>
    %96 = tpu.matmul %94, %6, %cst_23 {dimension_numbers = #tpu.dot_dimension_numbers<[1], [0], [0], [1], [0, 0, 1, 1], [], []>} : vector<2x32xf32>, vector<32x128xf32>, vector<2x128xf32> -> vector<2x128xf32>
    %97 = arith.addf %95, %96 : vector<2x128xf32>
    %98 = arith.negf %97 : vector<2x128xf32>
    %99 = math.exp %98 : vector<2x128xf32>
    %cst_24 = arith.constant 1.000000e+00 : f32
    %100 = vector.broadcast %cst_24 : f32 to vector<2x128xf32>
    %101 = arith.addf %100, %99 : vector<2x128xf32>
    %102 = arith.divf %100, %101 : vector<2x128xf32>
    %103 = math.tanh %97 : vector<2x128xf32>
    %104 = vector.extract_strided_slice %102 {offsets = [0, 0], sizes = [2, 32], strides = [1, 1]} : vector<2x128xf32> to vector<2x32xf32>
    %105 = vector.extract_strided_slice %102 {offsets = [0, 32], sizes = [2, 32], strides = [1, 1]} : vector<2x128xf32> to vector<2x32xf32>
    %106 = vector.extract_strided_slice %103 {offsets = [0, 64], sizes = [2, 32], strides = [1, 1]} : vector<2x128xf32> to vector<2x32xf32>
    %107 = vector.extract_strided_slice %102 {offsets = [0, 96], sizes = [2, 32], strides = [1, 1]} : vector<2x128xf32> to vector<2x32xf32>
    %108 = arith.mulf %105, %92 : vector<2x32xf32>
    %109 = arith.mulf %104, %106 : vector<2x32xf32>
    %110 = arith.addf %108, %109 : vector<2x32xf32>
    %111 = math.tanh %110 : vector<2x32xf32>
    %112 = arith.mulf %107, %111 : vector<2x32xf32>
    %113 = vector.extract_strided_slice %20 {offsets = [10, 0], sizes = [2, 128], strides = [1, 1]} : vector<16x128xf32> to vector<2x128xf32>
    %cst_25 = arith.constant dense<0.000000e+00> : vector<2x128xf32>
    %114 = tpu.matmul %112, %6, %cst_25 {dimension_numbers = #tpu.dot_dimension_numbers<[1], [0], [0], [1], [0, 0, 1, 1], [], []>} : vector<2x32xf32>, vector<32x128xf32>, vector<2x128xf32> -> vector<2x128xf32>
    %115 = arith.addf %113, %114 : vector<2x128xf32>
    %116 = arith.negf %115 : vector<2x128xf32>
    %117 = math.exp %116 : vector<2x128xf32>
    %cst_26 = arith.constant 1.000000e+00 : f32
    %118 = vector.broadcast %cst_26 : f32 to vector<2x128xf32>
    %119 = arith.addf %118, %117 : vector<2x128xf32>
    %120 = arith.divf %118, %119 : vector<2x128xf32>
    %121 = math.tanh %115 : vector<2x128xf32>
    %122 = vector.extract_strided_slice %120 {offsets = [0, 0], sizes = [2, 32], strides = [1, 1]} : vector<2x128xf32> to vector<2x32xf32>
    %123 = vector.extract_strided_slice %120 {offsets = [0, 32], sizes = [2, 32], strides = [1, 1]} : vector<2x128xf32> to vector<2x32xf32>
    %124 = vector.extract_strided_slice %121 {offsets = [0, 64], sizes = [2, 32], strides = [1, 1]} : vector<2x128xf32> to vector<2x32xf32>
    %125 = vector.extract_strided_slice %120 {offsets = [0, 96], sizes = [2, 32], strides = [1, 1]} : vector<2x128xf32> to vector<2x32xf32>
    %126 = arith.mulf %123, %110 : vector<2x32xf32>
    %127 = arith.mulf %122, %124 : vector<2x32xf32>
    %128 = arith.addf %126, %127 : vector<2x32xf32>
    %129 = math.tanh %128 : vector<2x32xf32>
    %130 = arith.mulf %125, %129 : vector<2x32xf32>
    %131 = vector.extract_strided_slice %20 {offsets = [12, 0], sizes = [2, 128], strides = [1, 1]} : vector<16x128xf32> to vector<2x128xf32>
    %cst_27 = arith.constant dense<0.000000e+00> : vector<2x128xf32>
    %132 = tpu.matmul %130, %6, %cst_27 {dimension_numbers = #tpu.dot_dimension_numbers<[1], [0], [0], [1], [0, 0, 1, 1], [], []>} : vector<2x32xf32>, vector<32x128xf32>, vector<2x128xf32> -> vector<2x128xf32>
    %133 = arith.addf %131, %132 : vector<2x128xf32>
    %134 = arith.negf %133 : vector<2x128xf32>
    %135 = math.exp %134 : vector<2x128xf32>
    %cst_28 = arith.constant 1.000000e+00 : f32
    %136 = vector.broadcast %cst_28 : f32 to vector<2x128xf32>
    %137 = arith.addf %136, %135 : vector<2x128xf32>
    %138 = arith.divf %136, %137 : vector<2x128xf32>
    %139 = math.tanh %133 : vector<2x128xf32>
    %140 = vector.extract_strided_slice %138 {offsets = [0, 0], sizes = [2, 32], strides = [1, 1]} : vector<2x128xf32> to vector<2x32xf32>
    %141 = vector.extract_strided_slice %138 {offsets = [0, 32], sizes = [2, 32], strides = [1, 1]} : vector<2x128xf32> to vector<2x32xf32>
    %142 = vector.extract_strided_slice %139 {offsets = [0, 64], sizes = [2, 32], strides = [1, 1]} : vector<2x128xf32> to vector<2x32xf32>
    %143 = vector.extract_strided_slice %138 {offsets = [0, 96], sizes = [2, 32], strides = [1, 1]} : vector<2x128xf32> to vector<2x32xf32>
    %144 = arith.mulf %141, %128 : vector<2x32xf32>
    %145 = arith.mulf %140, %142 : vector<2x32xf32>
    %146 = arith.addf %144, %145 : vector<2x32xf32>
    %147 = math.tanh %146 : vector<2x32xf32>
    %148 = arith.mulf %143, %147 : vector<2x32xf32>
    %149 = vector.extract_strided_slice %20 {offsets = [14, 0], sizes = [2, 128], strides = [1, 1]} : vector<16x128xf32> to vector<2x128xf32>
    %cst_29 = arith.constant dense<0.000000e+00> : vector<2x128xf32>
    %150 = tpu.matmul %148, %6, %cst_29 {dimension_numbers = #tpu.dot_dimension_numbers<[1], [0], [0], [1], [0, 0, 1, 1], [], []>} : vector<2x32xf32>, vector<32x128xf32>, vector<2x128xf32> -> vector<2x128xf32>
    %151 = arith.addf %149, %150 : vector<2x128xf32>
    %152 = arith.negf %151 : vector<2x128xf32>
    %153 = math.exp %152 : vector<2x128xf32>
    %cst_30 = arith.constant 1.000000e+00 : f32
    %154 = vector.broadcast %cst_30 : f32 to vector<2x128xf32>
    %155 = arith.addf %154, %153 : vector<2x128xf32>
    %156 = arith.divf %154, %155 : vector<2x128xf32>
    %157 = math.tanh %151 : vector<2x128xf32>
    %158 = vector.extract_strided_slice %156 {offsets = [0, 0], sizes = [2, 32], strides = [1, 1]} : vector<2x128xf32> to vector<2x32xf32>
    %159 = vector.extract_strided_slice %156 {offsets = [0, 32], sizes = [2, 32], strides = [1, 1]} : vector<2x128xf32> to vector<2x32xf32>
    %160 = vector.extract_strided_slice %157 {offsets = [0, 64], sizes = [2, 32], strides = [1, 1]} : vector<2x128xf32> to vector<2x32xf32>
    %161 = vector.extract_strided_slice %156 {offsets = [0, 96], sizes = [2, 32], strides = [1, 1]} : vector<2x128xf32> to vector<2x32xf32>
    %162 = arith.mulf %159, %146 : vector<2x32xf32>
    %163 = arith.mulf %158, %160 : vector<2x32xf32>
    %164 = arith.addf %162, %163 : vector<2x32xf32>
    %165 = math.tanh %164 : vector<2x32xf32>
    %166 = arith.mulf %161, %165 : vector<2x32xf32>
    %c136 = arith.constant 136 : index
    %c0_31 = arith.constant 0 : index
    %167 = vector.load %arg2[%c136, %c0_31] : memref<176x128xf32, #tpu.memory_space<vmem>>, vector<32x5xf32>
    %c168 = arith.constant 168 : index
    %c0_32 = arith.constant 0 : index
    %168 = vector.load %arg2[%c168, %c0_32] : memref<176x128xf32, #tpu.memory_space<vmem>>, vector<1x5xf32>
    %cst_33 = arith.constant dense<0.000000e+00> : vector<2x5xf32>
    %169 = tpu.matmul %166, %167, %cst_33 {dimension_numbers = #tpu.dot_dimension_numbers<[1], [0], [0], [1], [0, 0, 1, 1], [], []>} : vector<2x32xf32>, vector<32x5xf32>, vector<2x5xf32> -> vector<2x5xf32>
    %170 = vector.broadcast %168 : vector<1x5xf32> to vector<2x5xf32>
    %171 = arith.addf %169, %170 : vector<2x5xf32>
    %172 = vector.extract_strided_slice %171 {offsets = [0, 0], sizes = [2, 4], strides = [1, 1]} : vector<2x5xf32> to vector<2x4xf32>
    %cst_34 = arith.constant dense<0xFF800000> : vector<2xf32>
    %173 = vector.multi_reduction <maximumf>, %172, %cst_34 [1] : vector<2x4xf32> to vector<2xf32>
    %174 = vector.shape_cast %173 : vector<2xf32> to vector<2x1xf32>
    %175 = vector.broadcast %174 : vector<2x1xf32> to vector<2x4xf32>
    %176 = arith.subf %172, %175 : vector<2x4xf32>
    %177 = math.exp %176 : vector<2x4xf32>
    %cst_35 = arith.constant dense<0.000000e+00> : vector<2xf32>
    %178 = vector.multi_reduction <add>, %177, %cst_35 [1] : vector<2x4xf32> to vector<2xf32>
    %179 = vector.shape_cast %178 : vector<2xf32> to vector<2x1xf32>
    %180 = vector.broadcast %179 : vector<2x1xf32> to vector<2x4xf32>
    %181 = arith.divf %177, %180 : vector<2x4xf32>
    %182 = vector.extract_strided_slice %171 {offsets = [0, 4], sizes = [2, 1], strides = [1, 1]} : vector<2x5xf32> to vector<2x1xf32>
    %cst_36 = arith.constant 0.000000e+00 : f32
    %183 = vector.broadcast %cst_36 : f32 to vector<2x128xf32>
    %c0_37 = arith.constant 0 : index
    %c0_38 = arith.constant 0 : index
    %184 = vector.load %arg3[%c0_37, %c0_38] : memref<2x128xf32, #tpu.memory_space<vmem>>, vector<2x128xf32>
    tpu.vector_store %arg3[%c0_37, %c0_38], %183 {strides = array<i32>} : memref<2x128xf32, #tpu.memory_space<vmem>>, vector<2x128xf32>,
    %c0_39 = arith.constant 0 : index
    %c0_40 = arith.constant 0 : index
    %185 = vector.load %arg3[%c0_39, %c0_40] : memref<2x128xf32, #tpu.memory_space<vmem>>, vector<2x4xf32>
    tpu.vector_store %arg3[%c0_39, %c0_40], %181 {strides = array<i32>} : memref<2x128xf32, #tpu.memory_space<vmem>>, vector<2x4xf32>,
    %c0_41 = arith.constant 0 : index
    %c4 = arith.constant 4 : index
    %186 = vector.load %arg3[%c0_41, %c4] : memref<2x128xf32, #tpu.memory_space<vmem>>, vector<2x1xf32>
    tpu.vector_store %arg3[%c0_41, %c4], %182 {strides = array<i32>} : memref<2x128xf32, #tpu.memory_space<vmem>>, vector<2x1xf32>,
    %c0_42 = arith.constant 0 : index
    %c32 = arith.constant 32 : index
    %187 = vector.load %arg3[%c0_42, %c32] : memref<2x128xf32, #tpu.memory_space<vmem>>, vector<2x32xf32>
    tpu.vector_store %arg3[%c0_42, %c32], %166 {strides = array<i32>} : memref<2x128xf32, #tpu.memory_space<vmem>>, vector<2x32xf32>,
    %c0_43 = arith.constant 0 : index
    %c64_44 = arith.constant 64 : index
    %188 = vector.load %arg3[%c0_43, %c64_44] : memref<2x128xf32, #tpu.memory_space<vmem>>, vector<2x32xf32>
    tpu.vector_store %arg3[%c0_43, %c64_44], %164 {strides = array<i32>} : memref<2x128xf32, #tpu.memory_space<vmem>>, vector<2x32xf32>,
    return
  }
  func.func @transform_0(%arg0: i32) -> (i32, i32) {
    %c0_i32 = arith.constant 0 : i32
    %c0_i32_0 = arith.constant 0 : i32
    %c0_i32_1 = arith.constant 0 : i32
    return %c0_i32, %c0_i32_0 : i32, i32
  }
  func.func @transform_1(%arg0: i32) -> (i32, i32) {
    %c0_i32 = arith.constant 0 : i32
    %c0_i32_0 = arith.constant 0 : i32
    %c0_i32_1 = arith.constant 0 : i32
    return %c0_i32, %c0_i32_0 : i32, i32
  }
  func.func @transform_2(%arg0: i32) -> (i32, i32) {
    %c0_i32 = arith.constant 0 : i32
    %c0_i32_0 = arith.constant 0 : i32
    %c0_i32_1 = arith.constant 0 : i32
    return %c0_i32, %c0_i32_0 : i32, i32
  }
}

</mosaic_0001>

<bundles_post_ra>
// kernel: a3cnn_forward.1
= control target key start
LH: loop header
LB: loop body
LE: loop exit
PB: predicated region body
PF: predicated region fallthrough
CT: control target
= control target key end

     0   :  { %7 = vsyncpa [#allocation3], 0  ;;  %s1653_s9 = smov [#allocation2]   ;;  %s1828_s0 = inlined_call_operand.vmem [shape: f32[16,16], index: 0, kind: input, shape index: {}]   ;;  %s1829_s1 = inlined_call_operand.hbm [shape: f32[176,128], index: 1, kind: input, shape index: {}]   ;;  %s1830_s2 = inlined_call_operand.vmem [shape: f32[2,128], index: 2, kind: output, shape index: {}]  }
   0x1   :  { %s15_s10 = sshll.u32 %s1653_s9, 4  ;;  %s1629_s13 = scalar_lea.hbm %s1829_s1, 2816  ;;  %s16_s10 = int_to_ptr.vmem [resolvable:$true] %s15_s10 }
   0x2   :  { %p1630_p0 = scmp.ne.s32.totalorder %s1829_s1, %s1629_s13  ;;  %p1633_p1 = scmp.lt.u32.totalorder %s1629_s13, %s1829_s1 }
   0x4   :  { %p1635_p2 = pnand %p1633_p1, %p1630_p0 }
   0x6   :  { %1638 = shalt.err (!%p1635_p2)
}
   0x7   :  { %s1639_s18 = scalar_lea.vmem %s16_s10, 2816  ;;  %p1644_p4 = scmp.lt.s32.totalorder %s16_s10, %s16_s10 }
   0x8   :  { %p1640_p3 = scmp.ne.s32.totalorder %s16_s10, %s1639_s18  ;;  %p1645_p5 = scmp.lt.s32.totalorder %s1639_s18, %s1639_s18 }
   0xa   :  { %p1646_p6 = por %p1645_p5, %p1644_p4 }
   0xc   :  { %p1647_p7 = pnand %p1646_p6, %p1640_p3 }
   0xe   :  { %1650 = shalt.err (!%p1647_p7)
}
   0xf   :  { %s1654_s19 = smov 128   ;;  %s1655_s20 = smov 8  }
  0x10   :  { %21 = dma.hbm_to_vmem [thread:$0]  %s1829_s1, 2816, %s16_s10, [#allocation3], %s1654_s19, %s1654_s19, %s1655_s20  }
  0x11   :  { %1651 = dma.done.wait [#allocation3], 2816  }
  0x12   :  { %1652 = vsyncadd [#allocation3], 4294964480  ;;  %vm48_vm0 = vcmask 130048   ;;  %v25_v0 = vld [vmem:[#allocation2] sm:$0xff]  ;;  %v26_v1 = vld [vmem:[#allocation2 + $0x8] sm:$0xff]  ;;  %vm136_vm1 = vcmask 261120  }
  0x13   :  { %v42_v2 = vld [vmem:[%s1828_s0] sm:$0xff]  ;;  %v1479_v3 = vpack.c.bf16 %v26_v1, %v25_v0  ;;  %v28_v4 = vld [vmem:[#allocation2 + $0x18] sm:$0xff]  ;;  %v43_v7 = vld [vmem:[%s1828_s0 + $0x8] sm:$0xff]  ;;  %v1656_v26 = vmov 0.0|0.0   ;;  %vm1657_vm2 = vmmov 0   ;;  %v1658_v31 = vmov 0.0  }
  0x14   :  { %1355 = vmatprep.mubr.msk.f32.mxu0 %vm48_vm0, %v42_v2  ;;  %v29_v5 = vld [vmem:[#allocation2 + $0x20] sm:$0xff]  ;;  %v30_v8 = vld [vmem:[#allocation2 + $0x28] sm:$0xff]  ;;  %v31_v9 = vld [vmem:[#allocation2 + $0x30] sm:$0xff]  ;;  %1244 = vst [vmem:[%s1830_s2] sm:$0x3] %v1658_v31  ;;  %s1659_s27 = smov 64   ;;  %s1660_s28 = smov 32  }
  0x15   :  { %v1483_v6 = vpack.c.bf16 %v29_v5, %v28_v4  ;;  %1480 = vmatprep.subr.bf16.mxu0 %v1479_v3  ;;  %v1487_v10 = vpack.c.bf16 %v31_v9, %v30_v8  ;;  %v33_v11 = vld [vmem:[#allocation2 + $0x40] sm:$0xff]  ;;  %v34_v12 = vld [vmem:[#allocation2 + $0x48] sm:$0xff]  ;;  %v1264_v14 = vld [vmem:[#allocation2 + $0x10] ss:$0 sm:$0xff]  ;;  %vm1232_vm3 = vcmask 25600   ;;  %vm1246_vm4 = vcmask 33824  }
  0x16   :  { %1482 = vmatpush3.bf16.msra.mxu0 %v1479_v3  ;;  %v1491_v13 = vpack.c.bf16 %v34_v12, %v33_v11  ;;  %v38_v21 = vld [vmem:[#allocation2 + $0x68] sm:$0xff]  ;;  %v39_v22 = vld [vmem:[#allocation2 + $0x70] sm:$0xff]  ;;  %v36_v25 = vld [vmem:[#allocation2 + $0x58] sm:$0xff]  ;;  %vm1251_vm5 = vcmask 523526   ;;  %vm1257_vm6 = vcmask 785926  }
  0x17   :  { %1484 = vmatprep.subr.bf16.mxu1 %v1483_v6  ;;  %v1696_v23 = vpack.c.bf16 %v39_v22, %v38_v21  ;;  %v35_v24 = vld [vmem:[#allocation2 + $0x50] sm:$0xff]  ;;  %v40_v28 = vld [vmem:[#allocation2 + $0x78] sm:$0xff]  ;;  %v41_v29 = vld [vmem:[#allocation2 + $0x80] sm:$0xff] }
  0x18   :  { %1486 = vmatpush3.bf16.msra.mxu1 %v1483_v6  ;;  %1492 = vmatprep.subr.bf16.mxu0 %v1491_v13  ;;  %v1495_v27 = vpack.c.bf16 %v36_v25, %v35_v24  ;;  %v1701_v30 = vpack.c.bf16 %v41_v29, %v40_v28  ;;  %v1267_v32 = vld [vmem:[#allocation2 + $0x38] ss:$0 sm:$0xff]  ;;  %v1270_v41 = vld [vmem:[#allocation2 + $0x60] ss:$0 sm:$0xff] }
  0x19   :  { %1356 = vmatmul.mubr.msk.f32.vlgmr.msra.gmra.mrb[0].mxu0 %vm48_vm0, %v43_v7  ;;  %1488 = vmatprep.subr.bf16.mxu1 %v1487_v10 }
  0x1a   :  { %1494 = vmatpush3.bf16.msra.mxu0 %v1491_v13 }
  0x1b   :  { %1496 = vmatprep.subr.bf16.mxu0 %v1495_v27 }
  0x1c   :  { %1490 = vmatpush3.bf16.msra.mxu1 %v1487_v10 }
  0x1d   :  { %1499 = vmatprep.subr.bf16.mxu1 %v1656_v26 }
  0x1e   :  { %1498 = vmatpush3.bf16.msra.mxu0 %v1495_v27 }
  0x1f   :  { %1505 = vmatprep.subr.bf16.mxu0 %v1656_v26 }
  0xec   :  { %v1357_v15 = vpop.f32.mrb[0].mxu0 }
  0xed   :  { %v127_v16 = vadd.f32 %v1357_v15, %v1264_v14  ;;  %v121_v17 = vpop.f32.mrb[1].mxu0 }
  0xee   :  { %v122_v18 = vadd.f32 %v1264_v14, %v121_v17 }
  0xef   :  { %v131_v20 = vmax.f32 %v127_v16, 0.0 }
  0xf0   :  { %v130_v19 = vmax.f32 %v122_v18, 0.0 }
  0xf2   :  { %1366 = vmatprep.mubr.msk.f32.mxu1 %vm136_vm1, %v130_v19 }
  0xf3   :  { %1367 = vmatmul.mubr.msk.f32.vlgmr.msra.gmra.mrb[0].mxu1 %vm136_vm1, %v131_v20 }
  0xf4   :  { %1501 = vmatpush3.bf16.msra.mxu1 %v1696_v23  ;;  %1388 = vmatprep.mubr.msk.f32.mxu1 %vm1657_vm2, %v1658_v31 }
  0xf5   :  { %1502 = vmatprep.subr.bf16.mxu1 %v1656_v26 }
  0xf8   :  { %1504 = vmatpush3.bf16.msra.mxu1 %v1701_v30 }
  0xf9   :  { %1511 = vmatprep.subr.bf16.mxu1 %v1656_v26 }
  0xfb   :  { %1389 = vmatmul.mubr.f32.vlgmr.msra.gmra.mrb[2].mxu1 %v1658_v31 }
  0xfc   :  { %1513 = vmatpush3.bf16.msra.mxu1 %v1696_v23  ;;  %1410 = vmatprep.mubr.msk.f32.mxu1 %vm1657_vm2, %v1658_v31 }
  0xfd   :  { %1514 = vmatprep.subr.bf16.mxu1 %v1656_v26 }
 0x100   :  { %1516 = vmatpush3.bf16.msra.mxu1 %v1701_v30 }
 0x101   :  { %1523 = vmatprep.subr.bf16.mxu1 %v1656_v26 }
 0x1c6   :  { %v1368_v33 = vpop.f32.mrb[0].mxu1 }
 0x1c7   :  { %v215_v34 = vadd.f32 %v1368_v33, %v1267_v32  ;;  %v209_v35 = vpop.f32.mrb[1].mxu1 }
 0x1c8   :  { %v210_v36 = vadd.f32 %v1267_v32, %v209_v35 }
 0x1c9   :  { %v219_v38 = vmax.f32 %v215_v34, 0.0 }
 0x1ca   :  { %v218_v37 = vmax.f32 %v210_v36, 0.0 }
 0x1cc   :  { %1377 = vmatprep.mubr.msk.f32.mxu0 %vm136_vm1, %v218_v37 }
 0x1cd   :  { %1378 = vmatmul.mubr.msk.f32.vlgmr.msra.gmra.mrb[2].mxu0 %vm136_vm1, %v219_v38 }
 0x1ce   :  { %1507 = vmatpush3.bf16.msra.mxu0 %v1696_v23  ;;  %1399 = vmatprep.mubr.msk.f32.mxu0 %vm1657_vm2, %v1658_v31  ;;  %v374_v39 = vpop.f32.mrb[2].mxu1 }
 0x1cf   :  { %1508 = vmatprep.subr.bf16.mxu0 %v1656_v26  ;;  %v1390_v40 = vpop.f32.mrb[3].mxu1 }
 0x1d2   :  { %1510 = vmatpush3.bf16.msra.mxu0 %v1701_v30 }
 0x1d3   :  { %1517 = vmatprep.subr.bf16.mxu0 %v1656_v26 }
 0x2a0   :  { %v1379_v42 = vpop.f32.mrb[2].mxu0 }
 0x2a1   :  { %v1727_v43 = vadd.f32 %v1379_v42, %v1270_v41  ;;  %v296_v44 = vpop.f32.mrb[3].mxu0 }
 0x2a2   :  { %v1729_v45 = vadd.f32 %v1270_v41, %v296_v44 }
 0x2a4   :  { %v378_v46 = vadd.f32 %v374_v39, %v1729_v45 }
 0x2a6   :  { %1561 = vtanh.f32 %v378_v46  ;;  %v1273_v48 = vmul.f32 -1.442695, %v378_v46 }
 0x2a8   :  { %1563 = vpow2.f32 %v1273_v48 }
 0x2b0   :  { %v1562_v47 = vpop.eup %1561 }
 0x2b1   :  { %388 = vrot.lane.b32.xlu0 %v1562_v47, %s1659_s27 }
 0x2b2   :  { %v1564_v49 = vpop.eup %1563 }
 0x2b3   :  { %v382_v50 = vadd.f32 1.0, %v1564_v49 }
 0x2b5   :  { %1565 = vrcp.f32 %v382_v50 }
 0x2bf   :  { %v1566_v51 = vpop.eup %1565 }
 0x2c0   :  { %v386_v54 = vmul.f32 0.0, %v1566_v51 }
 0x323   :  { %v389_v52 = vpop.permute.xlu0 %388 }
 0x324   :  { %v391_v53 = vmul.f32 %v1566_v51, %v389_v52 }
 0x326   :  { %393 = vrot.lane.b32.xlu0 %v391_v53, %s1660_s28 }
 0x398   :  { %v394_v55 = vpop.permute.xlu0 %393 }
 0x399   :  { %v396_v56 = vadd.f32 %v394_v55, %v386_v54 }
 0x39b   :  { %1567 = vtanh.f32 %v396_v56  ;;  %v490_v8 = vrot.slane %v396_v56, 6 }
 0x3a5   :  { %v1568_v57 = vpop.eup %1567 }
 0x3a6   :  { %399 = vrot.lane.b32.xlu1 %v1568_v57, %s1659_s27 }
 0x418   :  { %v400_v58 = vpop.permute.xlu1 %399 }
 0x419   :  { %v402_v59 = vmul.f32 %v1566_v51, %v400_v58 }
 0x41b   :  { %404 = vrot.lane.b32.xlu1 %v402_v59, %s1660_s28 }
 0x48d   :  { %v405_v60 = vpop.permute.xlu1 %404 }
 0x48e   :  { %1400 = vmatmul.mubr.msk.f32.vlgmr.msra.gmra.mrb[4].mxu0 %vm136_vm1, %v405_v60 }
 0x48f   :  { %1519 = vmatpush3.bf16.msra.mxu0 %v1696_v23  ;;  %1421 = vmatprep.mubr.msk.f32.mxu0 %vm1657_vm2, %v1658_v31 }
 0x490   :  { %1520 = vmatprep.subr.bf16.mxu0 %v1656_v26 }
 0x493   :  { %1522 = vmatpush3.bf16.msra.mxu0 %v1701_v30 }
 0x494   :  { %1529 = vmatprep.subr.bf16.mxu0 %v1656_v26 }
 0x561   :  { %v474_v61 = vpop.f32.mrb[4].mxu0 }
 0x562   :  { %v479_v62 = vrot.slane %v474_v61, 6  ;;  %v1401_v63 = vpop.f32.mrb[5].mxu0 }
 0x564   :  { %v481_v0 = vadd.f32 %v479_v62, %v1729_v45 }
 0x566   :  { %1569 = vtanh.f32 %v481_v0  ;;  %v1275_v2 = vmul.f32 -1.442695, %v481_v0 }
 0x568   :  { %1571 = vpow2.f32 %v1275_v2 }
 0x570   :  { %v1570_v1 = vpop.eup %1569 }
 0x571   :  { %494 = vrot.lane.b32.xlu0 %v1570_v1, %s1659_s27 }
 0x572   :  { %v1572_v3 = vpop.eup %1571 }
 0x573   :  { %v485_v4 = vadd.f32 1.0, %v1572_v3 }
 0x575   :  { %1573 = vrcp.f32 %v485_v4 }
 0x57f   :  { %v1574_v5 = vpop.eup %1573 }
 0x580   :  { %v492_v9 = vmul.f32 %v1574_v5, %v490_v8 }
 0x5e3   :  { %v495_v6 = vpop.permute.xlu0 %494 }
 0x5e4   :  { %v497_v7 = vmul.f32 %v1574_v5, %v495_v6 }
 0x5e6   :  { %499 = vrot.lane.b32.xlu1 %v497_v7, %s1660_s28 }
 0x658   :  { %v500_v10 = vpop.permute.xlu1 %499 }
 0x659   :  { %v502_v11 = vadd.f32 %v500_v10, %v492_v9 }
 0x65b   :  { %1575 = vtanh.f32 %v502_v11  ;;  %v597_v32 = vrot.slane %v502_v11, 6 }
 0x665   :  { %v1576_v12 = vpop.eup %1575 }
 0x666   :  { %505 = vrot.lane.b32.xlu0 %v1576_v12, %s1659_s27 }
 0x6d8   :  { %v506_v13 = vpop.permute.xlu0 %505 }
 0x6d9   :  { %v508_v14 = vmul.f32 %v1574_v5, %v506_v13 }
 0x6db   :  { %v510_v15 = vrot.slane %v508_v14, 2 }
 0x6dd   :  { %511 = vrot.lane.b32.xlu1 %v510_v15, %s1660_s28 }
 0x74f   :  { %v512_v16 = vpop.permute.xlu1 %511 }
 0x750   :  { %1411 = vmatmul.mubr.msk.f32.vlgmr.msra.gmra.mrb[4].mxu1 %vm136_vm1, %v512_v16 }
 0x751   :  { %1525 = vmatpush3.bf16.msra.mxu1 %v1696_v23  ;;  %1432 = vmatprep.mubr.msk.f32.mxu1 %vm1657_vm2, %v1658_v31 }
 0x752   :  { %1526 = vmatprep.subr.bf16.mxu1 %v1656_v26 }
 0x755   :  { %1528 = vmatpush3.bf16.msra.mxu1 %v1701_v30 }
 0x756   :  { %1535 = vmatprep.subr.bf16.mxu1 %v1656_v26 }
 0x823   :  { %v581_v17 = vpop.f32.mrb[4].mxu1 }
 0x824   :  { %v586_v18 = vrot.slane %v581_v17, 4  ;;  %v1412_v19 = vpop.f32.mrb[5].mxu1 }
 0x826   :  { %v588_v20 = vadd.f32 %v586_v18, %v1729_v45 }
 0x828   :  { %1577 = vtanh.f32 %v588_v20  ;;  %v1277_v22 = vmul.f32 -1.442695, %v588_v20 }
 0x82a   :  { %1579 = vpow2.f32 %v1277_v22 }
 0x832   :  { %v1578_v21 = vpop.eup %1577 }
 0x833   :  { %601 = vrot.lane.b32.xlu0 %v1578_v21, %s1659_s27 }
 0x834   :  { %v1580_v24 = vpop.eup %1579 }
 0x835   :  { %v592_v25 = vadd.f32 1.0, %v1580_v24 }
 0x837   :  { %1581 = vrcp.f32 %v592_v25 }
 0x841   :  { %v1582_v27 = vpop.eup %1581 }
 0x842   :  { %v599_v33 = vmul.f32 %v1582_v27, %v597_v32 }
 0x8a5   :  { %v602_v28 = vpop.permute.xlu0 %601 }
 0x8a6   :  { %v604_v29 = vmul.f32 %v1582_v27, %v602_v28 }
 0x8a8   :  { %606 = vrot.lane.b32.xlu1 %v604_v29, %s1660_s28 }
 0x91a   :  { %v607_v34 = vpop.permute.xlu1 %606 }
 0x91b   :  { %v609_v35 = vadd.f32 %v607_v34, %v599_v33 }
 0x91d   :  { %1583 = vtanh.f32 %v609_v35  ;;  %v704_v54 = vrot.slane %v609_v35, 6 }
 0x927   :  { %v1584_v36 = vpop.eup %1583 }
 0x928   :  { %612 = vrot.lane.b32.xlu0 %v1584_v36, %s1659_s27 }
 0x99a   :  { %v613_v37 = vpop.permute.xlu0 %612 }
 0x99b   :  { %v615_v38 = vmul.f32 %v1582_v27, %v613_v37 }
 0x99d   :  { %v617_v39 = vrot.slane %v615_v38, 4 }
 0x99f   :  { %618 = vrot.lane.b32.xlu1 %v617_v39, %s1660_s28 }
 0xa11   :  { %v619_v40 = vpop.permute.xlu1 %618 }
 0xa12   :  { %1422 = vmatmul.mubr.msk.f32.vlgmr.msra.gmra.mrb[6].mxu0 %vm136_vm1, %v619_v40 }
 0xa13   :  { %1531 = vmatpush3.bf16.msra.mxu0 %v1696_v23  ;;  %1443 = vmatprep.mubr.msk.f32.mxu0 %vm1657_vm2, %v1658_v31 }
 0xa14   :  { %1532 = vmatprep.subr.bf16.mxu0 %v1656_v26 }
 0xa17   :  { %1534 = vmatpush3.bf16.msra.mxu0 %v1701_v30 }
 0xa18   :  { %1541 = vmatprep.subr.bf16.mxu0 %v1656_v26 }
 0xae5   :  { %v688_v41 = vpop.f32.mrb[6].mxu0 }
 0xae6   :  { %v693_v42 = vrot.slane %v688_v41, 2  ;;  %v1423_v44 = vpop.f32.mrb[7].mxu0 }
 0xae8   :  { %v695_v46 = vadd.f32 %v693_v42, %v1729_v45 }
 0xaea   :  { %1585 = vtanh.f32 %v695_v46  ;;  %v1279_v48 = vmul.f32 -1.442695, %v695_v46 }
 0xaec   :  { %1587 = vpow2.f32 %v1279_v48 }
 0xaf4   :  { %v1586_v47 = vpop.eup %1585 }
 0xaf5   :  { %708 = vrot.lane.b32.xlu0 %v1586_v47, %s1659_s27 }
 0xaf6   :  { %v1588_v49 = vpop.eup %1587 }
 0xaf7   :  { %v699_v50 = vadd.f32 1.0, %v1588_v49 }
 0xaf9   :  { %1589 = vrcp.f32 %v699_v50 }
 0xb03   :  { %v1590_v51 = vpop.eup %1589 }
 0xb04   :  { %v706_v55 = vmul.f32 %v1590_v51, %v704_v54 }
 0xb67   :  { %v709_v52 = vpop.permute.xlu0 %708 }
 0xb68   :  { %v711_v53 = vmul.f32 %v1590_v51, %v709_v52 }
 0xb6a   :  { %713 = vrot.lane.b32.xlu1 %v711_v53, %s1660_s28 }
 0xbdc   :  { %v714_v56 = vpop.permute.xlu1 %713 }
 0xbdd   :  { %v716_v57 = vadd.f32 %v714_v56, %v706_v55 }
 0xbdf   :  { %1591 = vtanh.f32 %v716_v57  ;;  %v808_v8 = vrot.slane %v716_v57, 6 }
 0xbe9   :  { %v1592_v45 = vpop.eup %1591 }
 0xbea   :  { %719 = vrot.lane.b32.xlu0 %v1592_v45, %s1659_s27 }
 0xc5c   :  { %v720_v58 = vpop.permute.xlu0 %719 }
 0xc5d   :  { %v722_v59 = vmul.f32 %v1590_v51, %v720_v58 }
 0xc5f   :  { %v724_v60 = vrot.slane %v722_v59, 6 }
 0xc61   :  { %725 = vrot.lane.b32.xlu1 %v724_v60, %s1660_s28 }
 0xcd3   :  { %v726_v61 = vpop.permute.xlu1 %725 }
 0xcd4   :  { %1433 = vmatmul.mubr.msk.f32.vlgmr.msra.gmra.mrb[6].mxu1 %vm136_vm1, %v726_v61 }
 0xcd5   :  { %1537 = vmatpush3.bf16.msra.mxu1 %v1696_v23  ;;  %1454 = vmatprep.mubr.msk.f32.mxu1 %vm1657_vm2, %v1658_v31 }
 0xcd6   :  { %1538 = vmatprep.subr.bf16.mxu1 %v1656_v26 }
 0xcd9   :  { %1540 = vmatpush3.bf16.msra.mxu1 %v1701_v30 }
 0xcda   :  { %1547 = vmatprep.subr.bf16.mxu1 %v1656_v26 }
 0xda7   :  { %v795_v62 = vpop.f32.mrb[6].mxu1 }
 0xda8   :  { %v799_v63 = vadd.f32 %v795_v62, %v1727_v43  ;;  %v1434_v0 = vpop.f32.mrb[7].mxu1 }
 0xdaa   :  { %1593 = vtanh.f32 %v799_v63  ;;  %v1281_v2 = vmul.f32 -1.442695, %v799_v63 }
 0xdac   :  { %1595 = vpow2.f32 %v1281_v2 }
 0xdb4   :  { %v1594_v1 = vpop.eup %1593 }
 0xdb5   :  { %812 = vrot.lane.b32.xlu0 %v1594_v1, %s1659_s27 }
 0xdb6   :  { %v1596_v3 = vpop.eup %1595 }
 0xdb7   :  { %v803_v4 = vadd.f32 1.0, %v1596_v3 }
 0xdb9   :  { %1597 = vrcp.f32 %v803_v4 }
 0xdc3   :  { %v1598_v5 = vpop.eup %1597 }
 0xdc4   :  { %v810_v9 = vmul.f32 %v1598_v5, %v808_v8 }
 0xe27   :  { %v813_v6 = vpop.permute.xlu0 %812 }
 0xe28   :  { %v815_v7 = vmul.f32 %v1598_v5, %v813_v6 }
 0xe2a   :  { %817 = vrot.lane.b32.xlu1 %v815_v7, %s1660_s28 }
 0xe9c   :  { %v818_v10 = vpop.permute.xlu1 %817 }
 0xe9d   :  { %v820_v11 = vadd.f32 %v818_v10, %v810_v9  ;;  %v1148_v9 = vld [vmem:[#allocation2 + $0x90] sm:$0xff]  ;;  %v1149_v10 = vld [vmem:[#allocation2 + $0x98] sm:$0xff] }
 0xe9f   :  { %1599 = vtanh.f32 %v820_v11 }
 0xea9   :  { %v1600_v12 = vpop.eup %1599 }
 0xeaa   :  { %823 = vrot.lane.b32.xlu0 %v1600_v12, %s1659_s27  ;;  %v1150_v12 = vld [vmem:[#allocation2 + $0xa0] sm:$0xff] }
 0xf1c   :  { %v824_v13 = vpop.permute.xlu0 %823 }
 0xf1d   :  { %v826_v14 = vmul.f32 %v1598_v5, %v824_v13  ;;  %v1551_v13 = vpack.c.bf16 %v1150_v12, %v1149_v10 }
 0xf1f   :  { %828 = vrot.lane.b32.xlu1 %v826_v14, %s1660_s28 }
 0xf91   :  { %v829_v15 = vpop.permute.xlu1 %828 }
 0xf92   :  { %1444 = vmatmul.mubr.msk.f32.vlgmr.msra.gmra.mrb[8].mxu0 %vm136_vm1, %v829_v15 }
 0xf93   :  { %1543 = vmatpush3.bf16.msra.mxu0 %v1696_v23  ;;  %1465 = vmatprep.mubr.msk.f32.mxu0 %vm1657_vm2, %v1658_v31 }
 0xf94   :  { %1544 = vmatprep.subr.bf16.mxu0 %v1656_v26 }
 0xf97   :  { %1546 = vmatpush3.bf16.msra.mxu0 %v1701_v30  ;;  %v914_v30 = vrot.slane %v820_v11, 6 }
0x1065   :  { %v898_v16 = vpop.f32.mrb[8].mxu0 }
0x1066   :  { %v903_v17 = vrot.slane %v898_v16, 6  ;;  %v1445_v18 = vpop.f32.mrb[9].mxu0 }
0x1068   :  { %v905_v19 = vadd.f32 %v903_v17, %v1727_v43 }
0x106a   :  { %1601 = vtanh.f32 %v905_v19  ;;  %v1283_v21 = vmul.f32 -1.442695, %v905_v19  ;;  %v1288_v19 = vld [vmem:[#allocation2 + $0xa8] ss:$0 sm:$0xff] }
0x106c   :  { %1603 = vpow2.f32 %v1283_v21 }
0x1074   :  { %v1602_v20 = vpop.eup %1601 }
0x1075   :  { %918 = vrot.lane.b32.xlu0 %v1602_v20, %s1659_s27 }
0x1076   :  { %v1604_v22 = vpop.eup %1603 }
0x1077   :  { %v909_v23 = vadd.f32 1.0, %v1604_v22 }
0x1079   :  { %1605 = vrcp.f32 %v909_v23 }
0x1083   :  { %v1606_v24 = vpop.eup %1605 }
0x1084   :  { %v916_v28 = vmul.f32 %v1606_v24, %v914_v30 }
0x10e7   :  { %v919_v25 = vpop.permute.xlu0 %918 }
0x10e8   :  { %v921_v27 = vmul.f32 %v1606_v24, %v919_v25 }
0x10ea   :  { %923 = vrot.lane.b32.xlu1 %v921_v27, %s1660_s28 }
0x115c   :  { %v924_v29 = vpop.permute.xlu1 %923 }
0x115d   :  { %v926_v32 = vadd.f32 %v924_v29, %v916_v28 }
0x115f   :  { %1607 = vtanh.f32 %v926_v32 }
0x1169   :  { %v1608_v33 = vpop.eup %1607 }
0x116a   :  { %929 = vrot.lane.b32.xlu0 %v1608_v33, %s1659_s27 }
0x11dc   :  { %v930_v34 = vpop.permute.xlu0 %929 }
0x11dd   :  { %v932_v35 = vmul.f32 %v1606_v24, %v930_v34 }
0x11df   :  { %v934_v36 = vrot.slane %v932_v35, 2 }
0x11e1   :  { %935 = vrot.lane.b32.xlu1 %v934_v36, %s1660_s28 }
0x1253   :  { %v936_v37 = vpop.permute.xlu1 %935 }
0x1254   :  { %1455 = vmatmul.mubr.msk.f32.vlgmr.msra.gmra.mrb[8].mxu1 %vm136_vm1, %v936_v37 }
0x1255   :  { %1476 = vmatprep.mubr.msk.f32.mxu1 %vm1657_vm2, %v1658_v31  ;;  %v1021_v31 = vrot.slane %v926_v32, 6 }
0x1327   :  { %v1005_v38 = vpop.f32.mrb[8].mxu1 }
0x1328   :  { %v1010_v39 = vrot.slane %v1005_v38, 4  ;;  %v1456_v40 = vpop.f32.mrb[9].mxu1 }
0x132a   :  { %v1012_v41 = vadd.f32 %v1010_v39, %v1727_v43 }
0x132c   :  { %1609 = vtanh.f32 %v1012_v41  ;;  %v1285_v44 = vmul.f32 -1.442695, %v1012_v41 }
0x132e   :  { %1611 = vpow2.f32 %v1285_v44 }
0x1336   :  { %v1610_v42 = vpop.eup %1609 }
0x1337   :  { %1025 = vrot.lane.b32.xlu0 %v1610_v42, %s1659_s27 }
0x1338   :  { %v1612_v46 = vpop.eup %1611 }
0x1339   :  { %v1016_v47 = vadd.f32 1.0, %v1612_v46 }
0x133b   :  { %1613 = vrcp.f32 %v1016_v47 }
0x1345   :  { %v1614_v48 = vpop.eup %1613 }
0x1346   :  { %v1023_v51 = vmul.f32 %v1614_v48, %v1021_v31 }
0x13a9   :  { %v1026_v49 = vpop.permute.xlu0 %1025 }
0x13aa   :  { %v1028_v50 = vmul.f32 %v1614_v48, %v1026_v49 }
0x13ac   :  { %1030 = vrot.lane.b32.xlu1 %v1028_v50, %s1660_s28 }
0x141e   :  { %v1031_v52 = vpop.permute.xlu1 %1030 }
0x141f   :  { %v1033_v53 = vadd.f32 %v1031_v52, %v1023_v51 }
0x1421   :  { %1615 = vtanh.f32 %v1033_v53  ;;  %v1128_v5 = vrot.slane %v1033_v53, 6 }
0x142b   :  { %v1616_v54 = vpop.eup %1615 }
0x142c   :  { %1036 = vrot.lane.b32.xlu0 %v1616_v54, %s1659_s27 }
0x149e   :  { %v1037_v55 = vpop.permute.xlu0 %1036 }
0x149f   :  { %v1039_v56 = vmul.f32 %v1614_v48, %v1037_v55 }
0x14a1   :  { %v1041_v57 = vrot.slane %v1039_v56, 4 }
0x14a3   :  { %1042 = vrot.lane.b32.xlu1 %v1041_v57, %s1660_s28 }
0x1515   :  { %v1043_v45 = vpop.permute.xlu1 %1042 }
0x1516   :  { %1466 = vmatmul.mubr.msk.f32.vlgmr.msra.gmra.mrb[10].mxu0 %vm136_vm1, %v1043_v45 }
0x15e9   :  { %v1112_v58 = vpop.f32.mrb[10].mxu0 }
0x15ea   :  { %v1117_v59 = vrot.slane %v1112_v58, 2  ;;  %v1467_v60 = vpop.f32.mrb[11].mxu0 }
0x15ec   :  { %v1119_v61 = vadd.f32 %v1117_v59, %v1727_v43  ;;  %v1147_v43 = vld [vmem:[#allocation2 + $0x88] sm:$0xff] }
0x15ed   :  { %v1548_v11 = vpack.c.bf16 %v1148_v9, %v1147_v43 }
0x15ee   :  { %1617 = vtanh.f32 %v1119_v61  ;;  %v1287_v63 = vmul.f32 -1.442695, %v1119_v61 }
0x15ef   :  { %1549 = vmatpush3.bf16.msra.mxu1 %v1548_v11 }
0x15f0   :  { %1619 = vpow2.f32 %v1287_v63  ;;  %1550 = vmatprep.subr.bf16.mxu1 %v1656_v26 }
0x15f3   :  { %1552 = vmatpush3.bf16.msra.mxu1 %v1551_v13 }
0x15f8   :  { %v1618_v62 = vpop.eup %1617 }
0x15f9   :  { %1132 = vrot.lane.b32.xlu0 %v1618_v62, %s1659_s27 }
0x15fa   :  { %v1620_v0 = vpop.eup %1619 }
0x15fb   :  { %v1123_v1 = vadd.f32 1.0, %v1620_v0 }
0x15fd   :  { %1621 = vrcp.f32 %v1123_v1 }
0x1607   :  { %v1622_v2 = vpop.eup %1621 }
0x1608   :  { %v1130_v6 = vmul.f32 %v1622_v2, %v1128_v5 }
0x166b   :  { %v1133_v3 = vpop.permute.xlu0 %1132 }
0x166c   :  { %v1135_v4 = vmul.f32 %v1622_v2, %v1133_v3 }
0x166e   :  { %1137 = vrot.lane.b32.xlu1 %v1135_v4, %s1660_s28 }
0x16e0   :  { %v1138_v7 = vpop.permute.xlu1 %1137 }
0x16e1   :  { %v1140_v8 = vadd.f32 %v1138_v7, %v1130_v6 }
0x16e3   :  { %1623 = vtanh.f32 %v1140_v8 }
0x16ed   :  { %v1624_v14 = vpop.eup %1623 }
0x16ee   :  { %1143 = vrot.lane.b32.xlu0 %v1624_v14, %s1659_s27 }
0x1760   :  { %v1144_v15 = vpop.permute.xlu0 %1143 }
0x1761   :  { %v1146_v16 = vmul.f32 %v1622_v2, %v1144_v15 }
0x1763   :  { %v1157_v17 = vrot.slane %v1146_v16, 6 }
0x1765   :  { %1158 = vrot.lane.b32.xlu1 %v1157_v17, %s1660_s28 }
0x17d7   :  { %v1159_v18 = vpop.permute.xlu1 %1158 }
0x17d8   :  { %1477 = vmatmul.mubr.msk.f32.vlgmr.msra.gmra.mrb[10].mxu1 %vm136_vm1, %v1159_v18 }
0x18ab   :  { %v1228_v20 = vpop.f32.mrb[10].mxu1 }
0x18ac   :  { %v1229_v21 = vadd.f32 %v1288_v19, %v1228_v20  ;;  %v1478_v22 = vpop.f32.mrb[11].mxu1 }
0x18ae   :  { %v1233_v23 = vsel %vm1232_vm3, %v1229_v21, -inf }
0x18af   :  { %1234 = vmax.xlane.f32.xlu0 %v1233_v23 }
0x18c5   :  { %1248 = vrot.lane.b32.xlu0 %v1146_v16, %s1659_s27 }
0x193c   :  { %v1235_v26 = vpop.xlane.xlu0 %1234 }
0x193d   :  { %v1236_v24 = vsub.f32 %v1229_v21, %v1235_v26 }
0x193f   :  { %v1237_v25 = vmul.f32 1.442695, %v1236_v24 }
0x1940   :  { %v1249_v33 = vpop.permute.xlu0 %1248 }
0x1941   :  { %1625 = vpow2.f32 %v1237_v25 }
0x194b   :  { %v1626_v27 = vpop.eup %1625 }
0x194c   :  { %v1239_v30 = vsel %vm1232_vm3, %v1626_v27, 0.0 }
0x194d   :  { %1240 = vadd.xlane.f32.xlu1 %v1239_v30 }
0x195e   :  { %1254 = vrot.lane.b32.xlu1 %v1140_v8, %s1660_s28 }
0x19da   :  { %v1241_v28 = vpop.xlane.xlu1 %1240 }
0x19db   :  { %1627 = vrcp.f32 %v1241_v28 }
0x19de   :  { %v1255_v34 = vpop.permute.xlu1 %1254 }
0x19e5   :  { %v1628_v29 = vpop.eup %1627 }
0x19e6   :  { %v1243_v32 = vmul.f32 %v1628_v29, %v1626_v27 }
0x19e8   :  { %1245 = vst.msk [vmem:[%s1830_s2] sm:$0x3] %vm1232_vm3, %v1243_v32 }
0x19e9   :  { %1247 = vst.msk [vmem:[%s1830_s2] sm:$0x3] %vm1246_vm4, %v1229_v21 }
0x19ea   :  { %1252 = vst.msk [vmem:[%s1830_s2 - $0x6] sm:$0xc0] %vm1251_vm5, %v1249_v33 }
0x19eb   :  { %1258 = vst.msk [vmem:[%s1830_s2 - $0x6] sm:$0xc0] %vm1257_vm6, %v1255_v34 }
0x19ec   :  { %1263 = vsyncpa [#allocation3], 1 }

</bundles_post_ra>
